<compile_context>
chip_gen: v7x
topology: tpu7x:2x2x1
jax: 0.10.0
libtpu: 0.0.40
codegen_flags: <defaults>
</compile_context>

<pallas_src>
import math

import jax
import jax.numpy as jnp
from jax import lax
from jax.experimental import pallas as pl
from jax.experimental.pallas import tpu as pltpu

NUM_FEATURES = 13
NUM_HEADS = 2
HEAD_DIM = NUM_FEATURES // NUM_HEADS + (NUM_FEATURES % NUM_HEADS != 0)  # 7
EMBED_DIM = HEAD_DIM * NUM_HEADS                                        # 14
QKV_DIM = 3 * EMBED_DIM                                                 # 42
F_PAD = 16                                                              # 13 padded -> 16

# Row offsets inside the packed (PACK_ROWS, PACK_COLS) parameter slab.
R_ADJ_W, R_ADJ_B = 0, 13       # adjust_dims weight (13,14) / bias (14,)
R_QKV_W, R_QKV_B = 16, 30      # fused QKV weight (14,42) / bias (42,)
R_OUT_W, R_OUT_B = 32, 46      # out_proj weight (14,14) / bias (14,)
R_LIN_W, R_LIN_B = 48, 62      # final linear weight (14,16 padded) / bias (16,)
PACK_ROWS, PACK_COLS = 64, 48


def _make_kernel(bt, seq):
    """Kernel processing `bt` batch elements (bt*seq token rows) per grid step."""
    scale = 1.0 / math.sqrt(HEAD_DIM)

    def kernel(x_ref, p_ref, o_ref, qkv_ref, attn_ref):
        # ---- packed parameters (static slices; slab is grid-resident) ------
        w_adj = p_ref[R_ADJ_W:R_ADJ_W + NUM_FEATURES, 0:EMBED_DIM]   # (13, 14)
        b_adj = p_ref[R_ADJ_B:R_ADJ_B + 1, 0:EMBED_DIM]              # (1, 14)
        w_qkv = p_ref[R_QKV_W:R_QKV_W + EMBED_DIM, 0:QKV_DIM]        # (14, 42)
        b_qkv = p_ref[R_QKV_B:R_QKV_B + 1, 0:QKV_DIM]                # (1, 42)
        w_out = p_ref[R_OUT_W:R_OUT_W + EMBED_DIM, 0:EMBED_DIM]      # (14, 14)
        b_out = p_ref[R_OUT_B:R_OUT_B + 1, 0:EMBED_DIM]              # (1, 14)
        w_lin = p_ref[R_LIN_W:R_LIN_W + EMBED_DIM, 0:F_PAD]          # (14, 16)
        b_lin = p_ref[R_LIN_B:R_LIN_B + 1, 0:F_PAD]                  # (1, 16)

        # ---- token-wise projections as big (Bt*S, .) matmuls ---------------
        x = x_ref[...].astype(jnp.float32)                           # (Bt*S, 13)
        h = jnp.dot(x, w_adj, preferred_element_type=jnp.float32) + b_adj
        qkv_ref[...] = (jnp.dot(h, w_qkv, preferred_element_type=jnp.float32)
                        + b_qkv)                                     # (Bt*S, 42)

        # ---- per-batch-element (S, S) softmax attention ---------------------
        @pl.loop(0, bt)
        def _attend(b):
            base = b * seq
            if seq % 8 == 0:
                base = pl.multiple_of(base, 8)
            heads = []
            for hi in range(NUM_HEADS):                 # static, 2 heads
                q = qkv_ref[pl.ds(base, seq),
                            hi * HEAD_DIM:(hi + 1) * HEAD_DIM]            # (S, 7)
                k = qkv_ref[pl.ds(base, seq),
                            EMBED_DIM + hi * HEAD_DIM:
                            EMBED_DIM + (hi + 1) * HEAD_DIM]              # (S, 7)
                v = qkv_ref[pl.ds(base, seq),
                            2 * EMBED_DIM + hi * HEAD_DIM:
                            2 * EMBED_DIM + (hi + 1) * HEAD_DIM]          # (S, 7)
                # Scores: contract on head_dim (no explicit k.T / XLU transpose).
                s = lax.dot_general(q, k, (((1,), (1,)), ((), ())),
                                    preferred_element_type=jnp.float32) * scale
                m = jnp.max(s, axis=-1, keepdims=True)
                p = jnp.exp(s - m)
                denom = jnp.sum(p, axis=-1, keepdims=True)
                p = p * pl.reciprocal(denom, approx=True)                 # EUP
                heads.append(jnp.dot(p, v, preferred_element_type=jnp.float32))
            attn_ref[pl.ds(base, seq), :] = jnp.concatenate(heads, axis=-1)

        # ---- out_proj + final Linear as big matmuls; padded dense store ----
        attn = attn_ref[...]                                          # (Bt*S, 14)
        y = jnp.dot(attn, w_out, preferred_element_type=jnp.float32) + b_out
        out = jnp.dot(y, w_lin, preferred_element_type=jnp.float32) + b_lin
        o_ref[...] = out.astype(o_ref.dtype)                          # (Bt*S, 16)

    return kernel


def mha_imputation_pallas(x, packed_params, *, block_batch=128):
    """x: (B, S, 13).  packed_params: (64, 48) f32 slab from pack_params()."""
    B, S, F = x.shape
    assert F == NUM_FEATURES
    bt = max(1, min(block_batch, B))
    n_blocks = (B + bt - 1) // bt
    b_pad = n_blocks * bt
    if b_pad != B:
        x = jnp.pad(x, ((0, b_pad - B), (0, 0), (0, 0)))
    x2 = x.reshape(b_pad * S, F)                   # token rows: (B_pad*S, 13)
    n_tok = bt * S

    out2 = pl.pallas_call(
        _make_kernel(bt, S),
        out_shape=jax.ShapeDtypeStruct((b_pad * S, F_PAD), x.dtype),
        grid=(n_blocks,),
        in_specs=[
            pl.BlockSpec((n_tok, F), lambda i: (i, 0)),               # tokens
            pl.BlockSpec((PACK_ROWS, PACK_COLS), lambda i: (0, 0)),   # params (resident)
        ],
        out_specs=pl.BlockSpec((n_tok, F_PAD), lambda i: (i, 0)),
        scratch_shapes=[
            pltpu.VMEM((n_tok, QKV_DIM), jnp.float32),    # qkv of all tokens
            pltpu.VMEM((n_tok, EMBED_DIM), jnp.float32),  # concat head outputs
        ],
        compiler_params=pltpu.CompilerParams(
            dimension_semantics=("parallel",),
            vmem_limit_bytes=32 * 1024 * 1024),
    )(x2, packed_params)

    return out2.reshape(b_pad, S, F_PAD)[:B, :, :NUM_FEATURES]


def init_params(key):
    """Deterministic parameters in the PyTorch module's native layout."""
    F, E = NUM_FEATURES, EMBED_DIM
    ks = jax.random.split(key, 8)
    s = 0.2
    return dict(
        w_adj=s * jax.random.normal(ks[0], (F, E), jnp.float32),      # (in, out)
        b_adj=s * jax.random.normal(ks[1], (E,), jnp.float32),
        in_proj_w=s * jax.random.normal(ks[2], (3 * E, E), jnp.float32),  # torch layout
        in_proj_b=s * jax.random.normal(ks[3], (3 * E,), jnp.float32),
        out_proj_w=s * jax.random.normal(ks[4], (E, E), jnp.float32),     # torch layout
        out_proj_b=s * jax.random.normal(ks[5], (E,), jnp.float32),
        w_lin=s * jax.random.normal(ks[6], (E, F), jnp.float32),      # (in, out)
        b_lin=s * jax.random.normal(ks[7], (F,), jnp.float32),
    )


def pack_params(p):
    """Pack all weights/biases into one (64, 48) f32 slab (kernel layout)."""
    slab = jnp.zeros((PACK_ROWS, PACK_COLS), jnp.float32)
    slab = slab.at[R_ADJ_W:R_ADJ_W + NUM_FEATURES, 0:EMBED_DIM].set(p["w_adj"])
    slab = slab.at[R_ADJ_B, 0:EMBED_DIM].set(p["b_adj"])
    slab = slab.at[R_QKV_W:R_QKV_W + EMBED_DIM, 0:QKV_DIM].set(p["in_proj_w"].T)
    slab = slab.at[R_QKV_B, 0:QKV_DIM].set(p["in_proj_b"])
    slab = slab.at[R_OUT_W:R_OUT_W + EMBED_DIM, 0:EMBED_DIM].set(p["out_proj_w"].T)
    slab = slab.at[R_OUT_B, 0:EMBED_DIM].set(p["out_proj_b"])
    slab = slab.at[R_LIN_W:R_LIN_W + EMBED_DIM, 0:NUM_FEATURES].set(p["w_lin"])
    slab = slab.at[R_LIN_B, 0:NUM_FEATURES].set(p["b_lin"])
    return slab  # padded columns/rows stay zero -> padded output lanes are 0


def reference_forward(x, p):
    """Pure-JAX reference mirroring torch nn.MultiheadAttention forward."""
    E, H, hd = EMBED_DIM, NUM_HEADS, HEAD_DIM
    B, S, _ = x.shape
    h = x @ p["w_adj"] + p["b_adj"]
    q = h @ p["in_proj_w"][0 * E:1 * E].T + p["in_proj_b"][0 * E:1 * E]
    k = h @ p["in_proj_w"][1 * E:2 * E].T + p["in_proj_b"][1 * E:2 * E]
    v = h @ p["in_proj_w"][2 * E:3 * E].T + p["in_proj_b"][2 * E:3 * E]

    def split(t):
        return t.reshape(B, S, H, hd).transpose(0, 2, 1, 3)  # (B, H, S, hd)

    qh, kh, vh = split(q), split(k), split(v)
    scores = jnp.einsum("bhqd,bhkd->bhqk", qh, kh) / math.sqrt(hd)
    attn = jax.nn.softmax(scores, axis=-1)
    o = jnp.einsum("bhqk,bhkd->bhqd", attn, vh)
    o = o.transpose(0, 2, 1, 3).reshape(B, S, E)
    o = o @ p["out_proj_w"].T + p["out_proj_b"]
    return o @ p["w_lin"] + p["b_lin"]


if __name__ == "__main__":
    key = jax.random.PRNGKey(0)
    kp, kx = jax.random.split(key)
    params = init_params(kp)
    packed = pack_params(params)

    # Small shapes consistent with the module: (batch, seq, features=13).
    B, S = 4, 8
    x = jax.random.normal(kx, (B, S, NUM_FEATURES), jnp.float32)
    out = jax.block_until_ready(mha_imputation_pallas(x, packed))
    ref = reference_forward(x, params)
    assert out.shape == (B, S, NUM_FEATURES)
    err = float(jnp.max(jnp.abs(out - ref)))
    # Tolerance is loose-ish because the softmax uses the hardware approximate
    # reciprocal (EUP); real bugs would be orders of magnitude larger.
    assert err < 5e-3, f"max abs err = {err}"

    # Second call exercising multi-grid-step + batch-padding + block_batch path.
    B2 = 300
    x2 = jax.random.normal(jax.random.PRNGKey(1), (B2, S, NUM_FEATURES), jnp.float32)
    out2 = jax.block_until_ready(mha_imputation_pallas(x2, packed, block_batch=128))
    ref2 = reference_forward(x2, params)
    assert out2.shape == (B2, S, NUM_FEATURES)
    err2 = float(jnp.max(jnp.abs(out2 - ref2)))
    assert err2 < 5e-3, f"max abs err (large batch) = {err2}"

    print("KERNEL_OK")
</pallas_src>

<mosaic_0001>
module attributes {stable_mosaic.version = 11 : i64} {
  func.func @kernel(%arg0: i32, %arg1: memref<32x13xf32, #tpu.memory_space<vmem>>, %arg2: memref<64x48xf32, #tpu.memory_space<vmem>>, %arg3: memref<32x16xf32, #tpu.memory_space<vmem>>, %arg4: memref<32x42xf32, #tpu.memory_space<vmem>>, %arg5: memref<32x14xf32, #tpu.memory_space<vmem>>) attributes {dimension_semantics = [#tpu.dimension_semantics<parallel>], iteration_bounds = array<i64: 1>, scalar_prefetch = 0 : i64, scratch_operands = 2 : i64, tpu.core_type = #tpu.core_type<tc>, window_params = [{transform_indices = @transform_0, window_bounds = array<i64: 32, 13>}, {pipeline_mode = #tpu.pipeline_mode<synchronous>, transform_indices = @transform_1, window_bounds = array<i64: 64, 48>}, {transform_indices = @transform_2, window_bounds = array<i64: 32, 16>}]} {
    %c0 = arith.constant 0 : index
    %c0_0 = arith.constant 0 : index
    %0 = vector.load %arg2[%c0, %c0_0] : memref<64x48xf32, #tpu.memory_space<vmem>>, vector<13x14xf32>
    %c13 = arith.constant 13 : index
    %c0_1 = arith.constant 0 : index
    %1 = vector.load %arg2[%c13, %c0_1] : memref<64x48xf32, #tpu.memory_space<vmem>>, vector<1x14xf32>
    %c16 = arith.constant 16 : index
    %c0_2 = arith.constant 0 : index
    %2 = vector.load %arg2[%c16, %c0_2] : memref<64x48xf32, #tpu.memory_space<vmem>>, vector<14x42xf32>
    %c30 = arith.constant 30 : index
    %c0_3 = arith.constant 0 : index
    %3 = vector.load %arg2[%c30, %c0_3] : memref<64x48xf32, #tpu.memory_space<vmem>>, vector<1x42xf32>
    %c32 = arith.constant 32 : index
    %c0_4 = arith.constant 0 : index
    %4 = vector.load %arg2[%c32, %c0_4] : memref<64x48xf32, #tpu.memory_space<vmem>>, vector<14x14xf32>
    %c46 = arith.constant 46 : index
    %c0_5 = arith.constant 0 : index
    %5 = vector.load %arg2[%c46, %c0_5] : memref<64x48xf32, #tpu.memory_space<vmem>>, vector<1x14xf32>
    %c48 = arith.constant 48 : index
    %c0_6 = arith.constant 0 : index
    %6 = vector.load %arg2[%c48, %c0_6] : memref<64x48xf32, #tpu.memory_space<vmem>>, vector<14x16xf32>
    %c62 = arith.constant 62 : index
    %c0_7 = arith.constant 0 : index
    %7 = vector.load %arg2[%c62, %c0_7] : memref<64x48xf32, #tpu.memory_space<vmem>>, vector<1x16xf32>
    %c0_8 = arith.constant 0 : index
    %c0_9 = arith.constant 0 : index
    %8 = vector.load %arg1[%c0_8, %c0_9] : memref<32x13xf32, #tpu.memory_space<vmem>>, vector<32x13xf32>
    %cst = arith.constant dense<0.000000e+00> : vector<32x14xf32>
    %9 = tpu.matmul %8, %0, %cst {dimension_numbers = #tpu.dot_dimension_numbers<[1], [0], [0], [1], [0, 0, 1, 1], [], []>} : vector<32x13xf32>, vector<13x14xf32>, vector<32x14xf32> -> vector<32x14xf32>
    %10 = vector.broadcast %1 : vector<1x14xf32> to vector<32x14xf32>
    %11 = arith.addf %9, %10 : vector<32x14xf32>
    %cst_10 = arith.constant dense<0.000000e+00> : vector<32x42xf32>
    %12 = tpu.matmul %11, %2, %cst_10 {dimension_numbers = #tpu.dot_dimension_numbers<[1], [0], [0], [1], [0, 0, 1, 1], [], []>} : vector<32x14xf32>, vector<14x42xf32>, vector<32x42xf32> -> vector<32x42xf32>
    %13 = vector.broadcast %3 : vector<1x42xf32> to vector<32x42xf32>
    %14 = arith.addf %12, %13 : vector<32x42xf32>
    %c0_11 = arith.constant 0 : index
    %c0_12 = arith.constant 0 : index
    %15 = vector.load %arg4[%c0_11, %c0_12] : memref<32x42xf32, #tpu.memory_space<vmem>>, vector<32x42xf32>
    tpu.vector_store %arg4[%c0_11, %c0_12], %14 {strides = array<i32>} : memref<32x42xf32, #tpu.memory_space<vmem>>, vector<32x42xf32>,
    %c0_i32 = arith.constant 0 : i32
    %c4_i32 = arith.constant 4 : i32
    %16 = arith.addi %c0_i32, %c4_i32 : i32
    %c1_i32 = arith.constant 1 : i32
    scf.for %arg6 = %c0_i32 to %16 step %c1_i32  : i32 {
      %c1_i32_20 = arith.constant 1 : i32
      %25 = arith.muli %arg6, %c1_i32_20 : i32
      %c0_i32_21 = arith.constant 0 : i32
      %26 = arith.addi %c0_i32_21, %25 : i32
      %c8_i32 = arith.constant 8 : i32
      %27 = arith.muli %26, %c8_i32 : i32
      %28 = tpu.assume_multiple %27, 8 : i32
      %29 = arith.index_cast %28 : i32 to index
      %c0_22 = arith.constant 0 : index
      %30 = vector.load %arg4[%29, %c0_22] : memref<32x42xf32, #tpu.memory_space<vmem>>, vector<8x7xf32>
      %31 = arith.index_cast %28 : i32 to index
      %c14 = arith.constant 14 : index
      %32 = vector.load %arg4[%31, %c14] : memref<32x42xf32, #tpu.memory_space<vmem>>, vector<8x7xf32>
      %33 = arith.index_cast %28 : i32 to index
      %c28 = arith.constant 28 : index
      %34 = vector.load %arg4[%33, %c28] : memref<32x42xf32, #tpu.memory_space<vmem>>, vector<8x7xf32>
      %cst_23 = arith.constant dense<0.000000e+00> : vector<8x8xf32>
      %35 = tpu.matmul %30, %32, %cst_23 {dimension_numbers = #tpu.dot_dimension_numbers<[1], [1], [0], [0], [0, 0, 1, 0], [], []>} : vector<8x7xf32>, vector<8x7xf32>, vector<8x8xf32> -> vector<8x8xf32>
      %cst_24 = arith.constant 0.377964467 : f32
      %36 = vector.broadcast %cst_24 : f32 to vector<8x8xf32>
      %37 = arith.mulf %35, %36 : vector<8x8xf32>
      %cst_25 = arith.constant dense<0xFF800000> : vector<8xf32>
      %38 = vector.multi_reduction <maximumf>, %37, %cst_25 [1] : vector<8x8xf32> to vector<8xf32>
      %39 = vector.shape_cast %38 : vector<8xf32> to vector<8x1xf32>
      %40 = vector.broadcast %39 : vector<8x1xf32> to vector<8x8xf32>
      %41 = arith.subf %37, %40 : vector<8x8xf32>
      %42 = math.exp %41 : vector<8x8xf32>
      %cst_26 = arith.constant dense<0.000000e+00> : vector<8xf32>
      %43 = vector.multi_reduction <add>, %42, %cst_26 [1] : vector<8x8xf32> to vector<8xf32>
      %44 = vector.shape_cast %43 : vector<8xf32> to vector<8x1xf32>
      %45 = tpu.reciprocal %44 {approx = true} : vector<8x1xf32> -> vector<8x1xf32>
      %46 = vector.broadcast %45 : vector<8x1xf32> to vector<8x8xf32>
      %47 = arith.mulf %42, %46 : vector<8x8xf32>
      %cst_27 = arith.constant dense<0.000000e+00> : vector<8x7xf32>
      %48 = tpu.matmul %47, %34, %cst_27 {dimension_numbers = #tpu.dot_dimension_numbers<[1], [0], [0], [1], [0, 0, 1, 1], [], []>} : vector<8x8xf32>, vector<8x7xf32>, vector<8x7xf32> -> vector<8x7xf32>
      %49 = arith.index_cast %28 : i32 to index
      %c7 = arith.constant 7 : index
      %50 = vector.load %arg4[%49, %c7] : memref<32x42xf32, #tpu.memory_space<vmem>>, vector<8x7xf32>
      %51 = arith.index_cast %28 : i32 to index
      %c21 = arith.constant 21 : index
      %52 = vector.load %arg4[%51, %c21] : memref<32x42xf32, #tpu.memory_space<vmem>>, vector<8x7xf32>
      %53 = arith.index_cast %28 : i32 to index
      %c35 = arith.constant 35 : index
      %54 = vector.load %arg4[%53, %c35] : memref<32x42xf32, #tpu.memory_space<vmem>>, vector<8x7xf32>
      %cst_28 = arith.constant dense<0.000000e+00> : vector<8x8xf32>
      %55 = tpu.matmul %50, %52, %cst_28 {dimension_numbers = #tpu.dot_dimension_numbers<[1], [1], [0], [0], [0, 0, 1, 0], [], []>} : vector<8x7xf32>, vector<8x7xf32>, vector<8x8xf32> -> vector<8x8xf32>
      %cst_29 = arith.constant 0.377964467 : f32
      %56 = vector.broadcast %cst_29 : f32 to vector<8x8xf32>
      %57 = arith.mulf %55, %56 : vector<8x8xf32>
      %cst_30 = arith.constant dense<0xFF800000> : vector<8xf32>
      %58 = vector.multi_reduction <maximumf>, %57, %cst_30 [1] : vector<8x8xf32> to vector<8xf32>
      %59 = vector.shape_cast %58 : vector<8xf32> to vector<8x1xf32>
      %60 = vector.broadcast %59 : vector<8x1xf32> to vector<8x8xf32>
      %61 = arith.subf %57, %60 : vector<8x8xf32>
      %62 = math.exp %61 : vector<8x8xf32>
      %cst_31 = arith.constant dense<0.000000e+00> : vector<8xf32>
      %63 = vector.multi_reduction <add>, %62, %cst_31 [1] : vector<8x8xf32> to vector<8xf32>
      %64 = vector.shape_cast %63 : vector<8xf32> to vector<8x1xf32>
      %65 = tpu.reciprocal %64 {approx = true} : vector<8x1xf32> -> vector<8x1xf32>
      %66 = vector.broadcast %65 : vector<8x1xf32> to vector<8x8xf32>
      %67 = arith.mulf %62, %66 : vector<8x8xf32>
      %cst_32 = arith.constant dense<0.000000e+00> : vector<8x7xf32>
      %68 = tpu.matmul %67, %54, %cst_32 {dimension_numbers = #tpu.dot_dimension_numbers<[1], [0], [0], [1], [0, 0, 1, 1], [], []>} : vector<8x8xf32>, vector<8x7xf32>, vector<8x7xf32> -> vector<8x7xf32>
      %69 = tpu.concatenate %48, %68 in 1 : vector<8x7xf32>, vector<8x7xf32> -> vector<8x14xf32>
      %70 = arith.index_cast %28 : i32 to index
      %c0_33 = arith.constant 0 : index
      %71 = vector.load %arg5[%70, %c0_33] : memref<32x14xf32, #tpu.memory_space<vmem>>, vector<8x14xf32>
      tpu.vector_store %arg5[%70, %c0_33], %69 {strides = array<i32>} : memref<32x14xf32, #tpu.memory_space<vmem>>, vector<8x14xf32>,
    }
    %c4_i32_13 = arith.constant 4 : i32
    %c0_14 = arith.constant 0 : index
    %c0_15 = arith.constant 0 : index
    %17 = vector.load %arg5[%c0_14, %c0_15] : memref<32x14xf32, #tpu.memory_space<vmem>>, vector<32x14xf32>
    %cst_16 = arith.constant dense<0.000000e+00> : vector<32x14xf32>
    %18 = tpu.matmul %17, %4, %cst_16 {dimension_numbers = #tpu.dot_dimension_numbers<[1], [0], [0], [1], [0, 0, 1, 1], [], []>} : vector<32x14xf32>, vector<14x14xf32>, vector<32x14xf32> -> vector<32x14xf32>
    %19 = vector.broadcast %5 : vector<1x14xf32> to vector<32x14xf32>
    %20 = arith.addf %18, %19 : vector<32x14xf32>
    %cst_17 = arith.constant dense<0.000000e+00> : vector<32x16xf32>
    %21 = tpu.matmul %20, %6, %cst_17 {dimension_numbers = #tpu.dot_dimension_numbers<[1], [0], [0], [1], [0, 0, 1, 1], [], []>} : vector<32x14xf32>, vector<14x16xf32>, vector<32x16xf32> -> vector<32x16xf32>
    %22 = vector.broadcast %7 : vector<1x16xf32> to vector<32x16xf32>
    %23 = arith.addf %21, %22 : vector<32x16xf32>
    %c0_18 = arith.constant 0 : index
    %c0_19 = arith.constant 0 : index
    %24 = vector.load %arg3[%c0_18, %c0_19] : memref<32x16xf32, #tpu.memory_space<vmem>>, vector<32x16xf32>
    tpu.vector_store %arg3[%c0_18, %c0_19], %23 {strides = array<i32>} : memref<32x16xf32, #tpu.memory_space<vmem>>, vector<32x16xf32>,
    return
  }
  func.func @transform_0(%arg0: i32) -> (i32, i32) {
    %c0_i32 = arith.constant 0 : i32
    %c0_i32_0 = arith.constant 0 : i32
    return %arg0, %c0_i32 : i32, i32
  }
  func.func @transform_1(%arg0: i32) -> (i32, i32) {
    %c0_i32 = arith.constant 0 : i32
    %c0_i32_0 = arith.constant 0 : i32
    %c0_i32_1 = arith.constant 0 : i32
    return %c0_i32, %c0_i32_0 : i32, i32
  }
  func.func @transform_2(%arg0: i32) -> (i32, i32) {
    %c0_i32 = arith.constant 0 : i32
    %c0_i32_0 = arith.constant 0 : i32
    return %arg0, %c0_i32 : i32, i32
  }
}

</mosaic_0001>

<bundles_post_ra>
// kernel: tpu_custom_call.1
= control target key start
LH: loop header
LB: loop body
LE: loop exit
PB: predicated region body
PF: predicated region fallthrough
CT: control target
= control target key end

     0   :  { %vm44_vm0 = vcmask 1044480   ;;  %vm31_vm1 = vcmask 105472   ;;  %vm1003_vm2 = vmmov 1   ;;  %vm150_vm4 = vcmask 1045504   ;;  %s1101_s12 = smov 0   ;;  %s1170_s1 = inlined_call_operand.vmem [shape: f32[64,48], index: 1, kind: input, shape index: {}]   ;;  %s1171_s2 = inlined_call_operand.vmem [shape: f32[32,16], index: 2, kind: output, shape index: {}]   ;;  %s1172_s0 = inlined_call_operand.vmem [shape: f32[32,13], index: 0, kind: input, shape index: {}]  }
   0x1   :  { %v11_v0 = vld [vmem:[%s1170_s1] sm:$0xff]  ;;  %v12_v1 = vld [vmem:[%s1170_s1 + $0x8] sm:$0x1f]  ;;  %v1046_v4 = vld [vmem:[%s1170_s1 + $0x2e] ss:$0 sm:$0xff]  ;;  %vm137_vm6 = vcmask 113664  }
   0x2   :  { %v1036_v2 = vld [vmem:[%s1170_s1 + $0x20] sm:$0xff]  ;;  %v1041_v3 = vld [vmem:[%s1170_s1 + $0x28] sm:$0x3f]  ;;  %v1051_v5 = vld [vmem:[%s1170_s1 + $0x30] sm:$0xff]  ;;  %v946_v6 = vpack.c.bf16 %v12_v1, %v11_v0  ;;  %vm239_vm7 = vcmask 343040  }
   0x3   :  { %v1056_v7 = vld [vmem:[%s1170_s1 + $0x38] sm:$0x3f]  ;;  %v1061_v8 = vld [vmem:[%s1170_s1 + $0x3e] ss:$0 sm:$0xff]  ;;  %vm947_vm3 = vmpackc.low %vm44_vm0, %vm1003_vm2 }
   0x4   :  { %948 = vmatprep.subr.msk.bf16.mxu0 %vm947_vm3, %v946_v6  ;;  %v23_v9 = vld [vmem:[%s1172_s0] sm:$0xff]  ;;  %v24_v10 = vld [vmem:[%s1172_s0 + $0x8] sm:$0xff]  ;;  %v25_v11 = vld [vmem:[%s1172_s0 + $0x10] sm:$0xff] }
   0x5   :  { %951 = vmatpush3.bf16.msk.msra.mxu0 %vm947_vm3, %v946_v6  ;;  %890 = vmatprep.mubr.msk.f32.mxu0 %vm31_vm1, %v23_v9  ;;  %v26_v12 = vld [vmem:[%s1172_s0 + $0x18] sm:$0xff]  ;;  %v14_v13 = vld [vmem:[%s1170_s1 + $0x10] sm:$0xff]  ;;  %vm1083_vm5 = vmpackc.low %vm150_vm4, %vm1003_vm2 }
   0x6   :  { %v15_v14 = vld [vmem:[%s1170_s1 + $0x18] sm:$0x3f]  ;;  %v823_v17 = vld [vmem:[%s1170_s1 + $0xd] ss:$0 sm:$0xff]  ;;  %v829_v26 = vld [vmem:[%s1170_s1 + $0x1e] ss:$0 sm:$0xff] }
   0x7   :  { %v952_v15 = vpack.c.bf16 %v15_v14, %v14_v13 }
   0x8   :  { %891 = vmatmul.mubr.msk.f32.vlgmr.msra.gmra.mrb[0].mxu0 %vm31_vm1, %v24_v10 }
   0x9   :  { %893 = vmatprep.mubr.msk.f32.mxu0 %vm31_vm1, %v25_v11  ;;  %954 = vmatprep.subr.msk.bf16.mxu1 %vm1083_vm5, %v952_v15 }
   0xa   :  { %957 = vmatpush3.bf16.msk.msra.mxu1 %vm1083_vm5, %v952_v15 }
   0xc   :  { %894 = vmatmul.mubr.msk.f32.gmra.mrb[2].mxu0 %vm31_vm1, %v26_v12 }
  0xdb   :  { %v892_v18 = vpop.f32.mrb[0].mxu0 }
  0xdc   :  { %v114_v19 = vpop.f32.mrb[1].mxu0  ;;  %v120_v21 = vadd.f32 %v892_v18, %v823_v17 }
  0xdd   :  { %v115_v20 = vadd.f32 %v823_v17, %v114_v19 }
  0xdf   :  { %v895_v22 = vpop.f32.mrb[2].mxu0  ;;  %900 = vmatprep.mubr.msk.f32.mxu1 %vm137_vm6, %v115_v20 }
  0xe0   :  { %v124_v23 = vpop.f32.mrb[3].mxu0  ;;  %901 = vmatmul.mubr.msk.f32.vlgmr.msra.gmra.mrb[0].mxu1 %vm137_vm6, %v120_v21  ;;  %v130_v25 = vadd.f32 %v895_v22, %v823_v17 }
  0xe1   :  { %v125_v24 = vadd.f32 %v823_v17, %v124_v23 }
  0xe3   :  { %903 = vmatprep.mubr.msk.f32.mxu1 %vm137_vm6, %v125_v24 }
  0xe4   :  { %904 = vmatmul.mubr.msk.f32.gmra.mrb[2].mxu1 %vm137_vm6, %v130_v25 }
 0x1b3   :  { %v902_v27 = vpop.f32.mrb[0].mxu1 }
 0x1b4   :  { %v226_v28 = vadd.f32 %v902_v27, %v829_v26  ;;  %v220_v29 = vpop.f32.mrb[1].mxu1 }
 0x1b5   :  { %v221_v30 = vadd.f32 %v829_v26, %v220_v29 }
 0x1b6   :  { %241 = vst.msk [vmem:[#allocation2 + $0x8] sm:$0xff] %vm239_vm7, %v226_v28 }
 0x1b7   :  { %240 = vst.msk [vmem:[#allocation2] sm:$0xff] %vm239_vm7, %v221_v30  ;;  %v905_v31 = vpop.f32.mrb[2].mxu1 }
 0x1b8   :  { %v236_v32 = vadd.f32 %v905_v31, %v829_v26  ;;  %v230_v33 = vpop.f32.mrb[3].mxu1 }
 0x1b9   :  { %v231_v34 = vadd.f32 %v829_v26, %v230_v33 }
 0x1ba   :  { %243 = vst.msk [vmem:[#allocation2 + $0x18] sm:$0xff] %vm239_vm7, %v236_v32 }
 0x1bb   :  { %242 = vst.msk [vmem:[#allocation2 + $0x10] sm:$0xff] %vm239_vm7, %v231_v34 }
 0x1bc LB: > { %v1004_v35 = vmov 0.0   ;;  %vm1005_vm8 = vmmov 0   ;;  %s835_s1 = sshll.u32 %s1001_s12, 3  ;;  %s1006_s14 = smov 114   ;;  %vm256_vm9 = vcmask 56320   ;;  %vm332_vm10 = vcmask 64512   ;;  %s1001_s12 = sphi %s1101_s12, %s249_s12  }
 0x1bd   : > { %906 = vmatprep.subr.mxu0 %v1004_v35  ;;  %908 = vmatprep.mubr.msk.f32.mxu0 %vm1005_vm8, %v1004_v35  ;;  %s251_s13 = scalar_lea.vmem [#allocation2], %s835_s1  ;;  %s1007_s15 = smov 100  }
 0x1be   : > { %911 = vmatprep.subr.mxu1 %v1004_v35  ;;  %913 = vmatprep.mubr.msk.f32.mxu1 %vm1005_vm8, %v1004_v35  ;;  %s1008_s16 = smov 107   ;;  %s1009_s17 = smov 121  }
 0x1bf   : > { %s1010_s18 = smov 93   ;;  %s1011_s19 = smov 7  }
 0x1c0   : > { %s591_s20 = scalar_lea.vmem [#allocation3], %s835_s1  ;;  %s249_s12 = sadd.s32 1, %s1001_s12  }
 0x1c1   : > { %p246_p0 = scmp.ge.s32.totalorder %s249_s12, 4  }
 0x1c2   : > { %v252_v36 = vld [vmem:[%s251_s13] sm:$0xff]  ;;  %v958_v14 = vpack.c.bf16 (%p246_p0), %v1041_v3, %v1036_v2  ;;  %v964_v2 = vpack.c.bf16 (%p246_p0), %v1056_v7, %v1051_v5  ;;  %vm805_vm11 = vcmask (%p246_p0), 130048  }
 0x1c3   : > { %254 = vrot.lane.b32.xlu0 %v252_v36, %s1006_s14  ;;  %344 = vrot.lane.b32.xlu1 %v252_v36, %s1007_s15 }
 0x1c7   : > { %422 = vrot.lane.b32.xlu1 %v252_v36, %s1008_s16 }
 0x235   : > { %v255_v37 = vpop.permute.xlu0 %254  ;;  %v345_v42 = vpop.permute.xlu1 %344 }
 0x236   : > { %907 = vmatpush3.xpose.msk.msra.mxu0 %vm256_vm9, %v255_v37  ;;  %912 = vmatpush3.msra.mxu1 %v345_v42 }
 0x237   : > { %921 = vmatprep.subr.mxu0 %v1004_v35  ;;  %916 = vmatprep.subr.mxu1 %v1004_v35 }
 0x239   : > { %909 = vmatmul.mubr.msk.f32.vlgmr.msra.gmra.mrb[0].mxu0 %vm256_vm9, %v252_v36  ;;  %v423_v48 = vpop.permute.xlu1 %422 }
 0x23a   : > { %923 = vmatprep.mubr.msk.f32.mxu0 %vm1005_vm8, %v1004_v35 }
 0x30c   : > { %v327_v38 = vpop.f32.mrb[0].mxu0 }
 0x30d   : > { %v331_v39 = vmul.f32 0.37796447, %v327_v38  ;;  %v910_v40 = vpop.f32.mrb[1].mxu0 }
 0x30f   : > { %v333_v41 = vsel %vm332_vm10, %v331_v39, -inf }
 0x310   : > { %334 = vmax.xlane.f32.xlu0 %v333_v41 }
 0x39d   : > { %v335_v43 = vpop.xlane.xlu0 %334 }
 0x39e   : > { %v336_v44 = vsub.f32 %v331_v39, %v335_v43 }
 0x3a0   : > { %v337_v45 = vmul.f32 1.442695, %v336_v44 }
 0x3a2   : > { %987 = vpow2.f32 %v337_v45 }
 0x3ac   : > { %v988_v46 = vpop.eup %987 }
 0x3ad   : > { %v339_v47 = vsel %vm332_vm10, %v988_v46, 0.0 }
 0x3ae   : > { %340 = vadd.xlane.f32.xlu1 %v339_v47 }
 0x3bf   : > { %420 = vrot.lane.b32.xlu1 %v252_v36, %s1009_s17 }
 0x43b   : > { %v341_v49 = vpop.xlane.xlu1 %340 }
 0x43c   : > { %989 = vrcp.f32 %v341_v49 }
 0x43f   : > { %v421_v52 = vpop.permute.xlu1 %420 }
 0x446   : > { %v990_v50 = vpop.eup %989 }
 0x447   : > { %v343_v51 = vmul.f32 %v990_v50, %v988_v46 }
 0x449   : > { %914 = vmatmul.mubr.msk.f32.vlgmr.msra.gmra.mrb[0].mxu1 %vm332_vm10, %v343_v51 }
 0x44a   : > { %917 = vmatpush3.xpose.msk.msra.mxu1 %vm256_vm9, %v423_v48  ;;  %918 = vmatprep.mubr.msk.f32.mxu1 %vm1005_vm8, %v1004_v35 }
 0x44b   :  { %966 = vmatprep.subr.msk.bf16.mxu1 (%p246_p0), %vm1083_vm5, %v964_v2 }
 0x44d   : > { %919 = vmatmul.mubr.msk.f32.vlgmr.msra.gmra.mrb[2].mxu1 %vm256_vm9, %v421_v52 }
 0x44e   :  { %969 = vmatpush3.bf16.msk.msra.mxu1 (%p246_p0), %vm1083_vm5, %v964_v2 }
 0x51c   : > { %v416_v53 = vpop.f32.mrb[0].mxu1 }
 0x51d   : > { %v915_v54 = vpop.f32.mrb[1].mxu1 }
 0x520   : > { %v494_v55 = vpop.f32.mrb[2].mxu1 }
 0x521   : > { %v498_v56 = vmul.f32 0.37796447, %v494_v55  ;;  %v920_v57 = vpop.f32.mrb[3].mxu1 }
 0x523   : > { %v499_v58 = vsel %vm332_vm10, %v498_v56, -inf }
 0x524   : > { %500 = vmax.xlane.f32.xlu1 %v499_v58 }
 0x5b1   : > { %v501_v59 = vpop.xlane.xlu1 %500 }
 0x5b2   : > { %v502_v60 = vsub.f32 %v498_v56, %v501_v59 }
 0x5b4   : > { %v503_v61 = vmul.f32 1.442695, %v502_v60 }
 0x5b6   : > { %991 = vpow2.f32 %v503_v61 }
 0x5c0   : > { %v992_v62 = vpop.eup %991 }
 0x5c1   : > { %v505_v63 = vsel %vm332_vm10, %v992_v62, 0.0 }
 0x5c2   : > { %506 = vadd.xlane.f32.xlu0 %v505_v63 }
 0x5d8   : > { %510 = vrot.lane.b32.xlu0 %v252_v36, %s1010_s18 }
 0x64f   : > { %v507_v0 = vpop.xlane.xlu0 %506 }
 0x650   : > { %993 = vrcp.f32 %v507_v0 }
 0x653   : > { %v511_v1 = vpop.permute.xlu0 %510 }
 0x654   : > { %922 = vmatpush3.msra.mxu0 %v511_v1 }
 0x655   :  { %960 = vmatprep.subr.msk.bf16.mxu0 (%p246_p0), %vm1083_vm5, %v958_v14 }
 0x65a   : > { %v994_v6 = vpop.eup %993 }
 0x65b   : > { %v509_v9 = vmul.f32 %v994_v6, %v992_v62 }
 0x65d   : > { %924 = vmatmul.mubr.msk.f32.vlgmr.msra.gmra.mrb[2].mxu0 %vm332_vm10, %v509_v9 }
 0x65e   :  { %963 = vmatpush3.bf16.msk.msra.mxu0 (%p246_p0), %vm1083_vm5, %v958_v14 }
 0x730   : > { %v582_v10 = vpop.f32.mrb[2].mxu0 }
 0x731   : > { %587 = vrot.lane.b32.xlu0 %v582_v10, %s1011_s19  ;;  %v925_v11 = vpop.f32.mrb[3].mxu0 }
 0x79f   :  { %248 = sbr.rel (!%p246_p0) target bundleno = 444 (0x1bc), region = 37 }
 0x7a3   : > { %v588_v12 = vpop.permute.xlu0 %587 }
 0x7a4   : > { %v590_v13 = vsel %vm256_vm9, %v416_v53, %v588_v12 }
 0x7a5   : > { %592 = vst.msk [vmem:[%s591_s20] sm:$0xff] %vm137_vm6, %v590_v13 }
 0x7ac   :  { %v593_v15 = vld [vmem:[#allocation3] sm:$0xff]  ;;  %v594_v17 = vld [vmem:[#allocation3 + $0x8] sm:$0xff]  ;;  %v595_v18 = vld [vmem:[#allocation3 + $0x10] sm:$0xff] }
 0x7ad   :  { %930 = vmatprep.mubr.msk.f32.mxu0 %vm137_vm6, %v593_v15  ;;  %v596_v19 = vld [vmem:[#allocation3 + $0x18] sm:$0xff] }
 0x7ae   :  { %931 = vmatmul.mubr.msk.f32.vlgmr.msra.gmra.mrb[0].mxu0 %vm137_vm6, %v594_v17 }
 0x7af   :  { %933 = vmatprep.mubr.msk.f32.mxu0 %vm137_vm6, %v595_v18 }
 0x7b2   :  { %934 = vmatmul.mubr.msk.f32.gmra.mrb[2].mxu0 %vm137_vm6, %v596_v19 }
 0x881   :  { %v932_v3 = vpop.f32.mrb[0].mxu0 }
 0x882   :  { %v682_v20 = vpop.f32.mrb[1].mxu0  ;;  %v688_v22 = vadd.f32 %v932_v3, %v1046_v4 }
 0x883   :  { %v683_v21 = vadd.f32 %v1046_v4, %v682_v20 }
 0x885   :  { %v935_v23 = vpop.f32.mrb[2].mxu0  ;;  %940 = vmatprep.mubr.msk.f32.mxu1 %vm137_vm6, %v683_v21 }
 0x886   :  { %v692_v24 = vpop.f32.mrb[3].mxu0  ;;  %941 = vmatmul.mubr.msk.f32.vlgmr.msra.gmra.mrb[0].mxu1 %vm137_vm6, %v688_v22  ;;  %v698_v7 = vadd.f32 %v935_v23, %v1046_v4 }
 0x887   :  { %v693_v5 = vadd.f32 %v1046_v4, %v692_v24 }
 0x889   :  { %943 = vmatprep.mubr.msk.f32.mxu1 %vm137_vm6, %v693_v5 }
 0x88a   :  { %944 = vmatmul.mubr.msk.f32.gmra.mrb[2].mxu1 %vm137_vm6, %v698_v7 }
 0x959   :  { %v942_v16 = vpop.f32.mrb[0].mxu1 }
 0x95a   :  { %v792_v25 = vadd.f32 %v942_v16, %v1061_v8  ;;  %v786_v26 = vpop.f32.mrb[1].mxu1 }
 0x95b   :  { %v787_v27 = vadd.f32 %v1061_v8, %v786_v26 }
 0x95c   :  { %807 = vst.msk [vmem:[%s1171_s2 + $0x8] sm:$0xff] %vm805_vm11, %v792_v25 }
 0x95d   :  { %806 = vst.msk [vmem:[%s1171_s2] sm:$0xff] %vm805_vm11, %v787_v27  ;;  %v945_v4 = vpop.f32.mrb[2].mxu1 }
 0x95e   :  { %v802_v28 = vadd.f32 %v945_v4, %v1061_v8  ;;  %v796_v29 = vpop.f32.mrb[3].mxu1 }
 0x95f   :  { %v797_v30 = vadd.f32 %v1061_v8, %v796_v29 }
 0x960   :  { %809 = vst.msk [vmem:[%s1171_s2 + $0x18] sm:$0xff] %vm805_vm11, %v802_v28 }
 0x961   :  { %808 = vst.msk [vmem:[%s1171_s2 + $0x10] sm:$0xff] %vm805_vm11, %v797_v30 }

</bundles_post_ra>
